<compile_context>
chip_gen: v7x
topology: tpu7x:2x2x1
jax: 0.10.0
libtpu: 0.0.40
codegen_flags: <defaults>
</compile_context>

<pallas_src>
import functools

import jax
import jax.numpy as jnp
from jax.experimental import pallas as pl
from jax.experimental.pallas import tpu as pltpu


# ------------------------------- helpers ------------------------------------


def _l2n(x):
    # torch l2_norm: sum(x^2, dim=1) + 1e-12, sqrt, divide  ==  x * rsqrt(normp)
    normp = jnp.sum(x * x, axis=1, keepdims=True) + 1e-12
    return x * jax.lax.rsqrt(normp)


def _round_up(x, m):
    return ((x + m - 1) // m) * m


def _vmem_limit_bytes():
    # Generation-aware scoped-VMEM limit: 3/4 of physical, capped at 96 MiB
    # (v5e/v6e: 128 MiB physical -> 96 MiB; v7x: 64 MiB physical -> 48 MiB).
    try:
        cap = int(pltpu.get_tpu_info().vmem_capacity_bytes)
    except Exception:
        cap = 64 * 1024 * 1024          # conservative fallback (v7x-sized)
    return int(min(cap * 3 // 4, 96 * 1024 * 1024))


def _pick_block_rows(batch, d, cp, vmem_limit):
    # Per-step VMEM accounting:
    #   double-buffered inputs : z1 (2*TB*D*4) + noise (2*TB*D*4) + labels (2*TB*4)
    #   W^T + class bias       : 2*D*CP*2 + 2*CP*4   (constant index_map, resident)
    #   temporaries            : ~3 * TB*D*4 (z1n, scaled noise, z2)
    #                            + ~2 * TB*CP*4 (logits f32 + iota i32)
    fixed = 2 * d * cp * 2 + 2 * cp * 4 + (1 << 20)           # + 1 MiB slack
    budget = int(vmem_limit * 0.7) - fixed
    per_row = 28 * d + 8 * cp + 64
    tb = budget // max(per_row, 1)
    tb = max(8, min(4096, (tb // 8) * 8))
    return int(min(tb, _round_up(batch, 8)))


# ----------------------------- Pallas kernel --------------------------------


def loss_kernel(z1_ref, noise_ref, labels_ref, wt_ref, bias_ref, o_ref, *,
                k, b_actual, block_rows, normalize):
    i = pl.program_id(0)

    z1 = z1_ref[...]                                   # (TB, D) f32
    u = noise_ref[...]                                 # (TB, D) f32, uniform [0,1)
    tb, _ = z1.shape

    if normalize:
        # Row-wise l2 norms via rsqrt (EUP slot); k fused into the noise scale.
        z1n = z1 * jax.lax.rsqrt(jnp.sum(z1 * z1, axis=1, keepdims=True) + 1e-12)
        s = k * jax.lax.rsqrt(jnp.sum(u * u, axis=1, keepdims=True) + 1e-12)
        z2 = z1n + u * s
        z2 = z2 * jax.lax.rsqrt(jnp.sum(z2 * z2, axis=1, keepdims=True) + 1e-12)
    else:
        z2 = z1 + k * u

    # logits = z2 @ W^T : bf16 MXU operands, f32 accumulation.  W^T is padded to
    # CP (multiple of 128) lanes; padded columns are knocked out by the additive
    # bias row (0 for valid classes, -1e30 for padding).
    logits = jnp.dot(z2.astype(jnp.bfloat16), wt_ref[...],
                     preferred_element_type=jnp.float32)        # (TB, CP)
    logits = logits + bias_ref[...]                             # (1, CP) bcast

    cp = logits.shape[-1]
    m = jnp.max(logits, axis=1, keepdims=True)
    lse = jnp.log(jnp.sum(jnp.exp(logits - m), axis=1, keepdims=True)) + m

    # Target logit via iota compare (no one-hot DMA into the kernel).
    lbl = labels_ref[...]                              # (TB, 1) int32
    class_ids = jax.lax.broadcasted_iota(jnp.int32, (tb, cp), 1)
    tgt = jnp.sum(jnp.where(class_ids == lbl, logits, 0.0), axis=1, keepdims=True)

    # Mask rows that are batch padding, emit this tile's partial loss sum.
    row_ids = i * block_rows + jax.lax.broadcasted_iota(jnp.int32, (tb, 1), 0)
    per_row = jnp.where(row_ids < b_actual, lse - tgt, 0.0)     # (TB, 1)
    o_ref[...] = jnp.sum(per_row, keepdims=True)                # (1, 1) partial


# ------------------------------ JAX wrapper ----------------------------------


def linear_projection_loss(z1, labels, *, normalize=True, nb_classes=10, k=0.1,
                           noise_key=None):
    """Pallas implementation of LinearProjection.forward (noise='rand')."""
    z1 = z1.astype(jnp.float32)
    labels = labels.astype(jnp.int32)
    B, D = z1.shape
    C = int(nb_classes)
    CP = _round_up(max(C, 1), 128)                     # lane-dense class dim
    if noise_key is None:
        noise_key = jax.random.PRNGKey(1)

    # ---- small plain-JAX glue: one-hot, l2-norm for pinv, pinverse, W^T ----
    labels_bin = jax.nn.one_hot(labels, C, dtype=jnp.float32)        # (B, C)
    z1_for_w = _l2n(z1) if normalize else z1
    # TODO(synk): torch.pinverse (SVD) has no Pallas equivalent; plain JAX here.
    pinv = jnp.linalg.pinv(z1_for_w)                                  # (D, B)
    wt = jnp.dot(pinv, labels_bin)                                    # (D, C)
    wt_pad = jnp.zeros((D, CP), jnp.float32).at[:, :C].set(wt)
    wt_pad = wt_pad.astype(jnp.bfloat16)                              # MXU operand
    # Additive class mask: 0 for valid classes, -1e30 for lane padding.
    class_bias = jnp.where(jnp.arange(CP) < C, 0.0, -1e30)
    class_bias = class_bias.astype(jnp.float32).reshape(1, CP)

    # TODO(synk): noise == 'dropout' branch (F.dropout1d) not implemented;
    #             the module default is 'rand'.
    # TODO(synk): uniform noise uses jax.random (cannot reproduce torch.rand stream).

    # ---- pad batch to a multiple of the row tile and launch the kernel ----
    vmem_limit = _vmem_limit_bytes()
    TB = _pick_block_rows(B, D, CP, vmem_limit)
    BP = _round_up(B, TB)
    num_tiles = BP // TB
    z1_pad = jnp.zeros((BP, D), jnp.float32).at[:B].set(z1)
    lbl_pad = jnp.zeros((BP, 1), jnp.int32).at[:B, 0].set(labels)
    noise = jax.random.uniform(noise_key, (BP, D), dtype=jnp.float32)

    kernel = functools.partial(
        loss_kernel, k=float(k), b_actual=B, block_rows=TB,
        normalize=bool(normalize))

    cost = pl.CostEstimate(
        flops=int(2 * BP * D * CP + 15 * BP * D),
        transcendentals=int(BP * (CP + 3)),
        bytes_accessed=int(8 * BP * D + 4 * BP + 2 * D * CP + 4 * CP
                           + 4 * num_tiles),
    )

    partial = pl.pallas_call(
        kernel,
        out_shape=jax.ShapeDtypeStruct((num_tiles, 1), jnp.float32),
        grid_spec=pltpu.PrefetchScalarGridSpec(
            num_scalar_prefetch=0,
            grid=(num_tiles,),
            in_specs=[
                pl.BlockSpec((TB, D), lambda i: (i, 0)),      # z1 row tile
                pl.BlockSpec((TB, D), lambda i: (i, 0)),      # uniform noise tile
                pl.BlockSpec((TB, 1), lambda i: (i, 0)),      # labels row tile
                pl.BlockSpec((D, CP), lambda i: (0, 0)),      # W^T (VMEM-resident)
                pl.BlockSpec((1, CP), lambda i: (0, 0)),      # class-pad bias row
            ],
            out_specs=pl.BlockSpec((1, 1), lambda i: (i, 0)),  # per-tile partial sum
        ),
        compiler_params=pltpu.CompilerParams(
            dimension_semantics=("parallel",),     # independent tiles -> megacore OK
            vmem_limit_bytes=vmem_limit,
        ),
        cost_estimate=cost,
    )(z1_pad, noise, lbl_pad, wt_pad, class_bias)

    return jnp.sum(partial) / jnp.float32(B)           # mean reduction


# --------------------------------- main --------------------------------------


if __name__ == "__main__":
    key = jax.random.PRNGKey(0)
    k_z, k_lbl, k_noise = jax.random.split(key, 3)

    B, D, C = 8, 32, 10
    z1 = jax.random.normal(k_z, (B, D), dtype=jnp.float32)
    labels = jax.random.randint(k_lbl, (B,), 0, C, dtype=jnp.int32)

    loss = linear_projection_loss(z1, labels, normalize=True, nb_classes=C,
                                  k=0.1, noise_key=k_noise)
    loss = jax.block_until_ready(loss)
    assert jnp.isfinite(loss), loss
    print("KERNEL_OK")
</pallas_src>

<mosaic_0001>
module attributes {stable_mosaic.version = 11 : i64} {
  func.func @loss_kernel(%arg0: i32, %arg1: memref<8x32xf32, #tpu.memory_space<vmem>>, %arg2: memref<8x32xf32, #tpu.memory_space<vmem>>, %arg3: memref<8x1xi32, #tpu.memory_space<vmem>>, %arg4: memref<32x128xbf16, #tpu.memory_space<vmem>>, %arg5: memref<1x128xf32, #tpu.memory_space<vmem>>, %arg6: memref<1x1xf32, #tpu.memory_space<vmem>>) attributes {dimension_semantics = [#tpu.dimension_semantics<parallel>], iteration_bounds = array<i64: 1>, scalar_prefetch = 0 : i64, scratch_operands = 0 : i64, tpu.core_type = #tpu.core_type<tc>, window_params = [{transform_indices = @transform_0, window_bounds = array<i64: 8, 32>}, {transform_indices = @transform_1, window_bounds = array<i64: 8, 32>}, {transform_indices = @transform_2, window_bounds = array<i64: 8, 1>}, {pipeline_mode = #tpu.pipeline_mode<synchronous>, transform_indices = @transform_3, window_bounds = array<i64: 32, 128>}, {pipeline_mode = #tpu.pipeline_mode<synchronous>, transform_indices = @transform_4, window_bounds = array<i64: 1, 128>}, {transform_indices = @transform_5, window_bounds = array<i64: 1, 1>}]} {
    %c0 = arith.constant 0 : index
    %c0_0 = arith.constant 0 : index
    %0 = vector.load %arg1[%c0, %c0_0] : memref<8x32xf32, #tpu.memory_space<vmem>>, vector<8x32xf32>
    %c0_1 = arith.constant 0 : index
    %c0_2 = arith.constant 0 : index
    %1 = vector.load %arg2[%c0_1, %c0_2] : memref<8x32xf32, #tpu.memory_space<vmem>>, vector<8x32xf32>
    %2 = arith.mulf %0, %0 : vector<8x32xf32>
    %cst = arith.constant dense<0.000000e+00> : vector<8xf32>
    %3 = vector.multi_reduction <add>, %2, %cst [1] : vector<8x32xf32> to vector<8xf32>
    %4 = vector.shape_cast %3 : vector<8xf32> to vector<8x1xf32>
    %cst_3 = arith.constant 9.99999996E-13 : f32
    %5 = vector.broadcast %cst_3 : f32 to vector<8x1xf32>
    %6 = arith.addf %4, %5 : vector<8x1xf32>
    %7 = math.rsqrt %6 : vector<8x1xf32>
    %8 = vector.broadcast %7 : vector<8x1xf32> to vector<8x32xf32>
    %9 = arith.mulf %0, %8 : vector<8x32xf32>
    %10 = arith.mulf %1, %1 : vector<8x32xf32>
    %cst_4 = arith.constant dense<0.000000e+00> : vector<8xf32>
    %11 = vector.multi_reduction <add>, %10, %cst_4 [1] : vector<8x32xf32> to vector<8xf32>
    %12 = vector.shape_cast %11 : vector<8xf32> to vector<8x1xf32>
    %cst_5 = arith.constant 9.99999996E-13 : f32
    %13 = vector.broadcast %cst_5 : f32 to vector<8x1xf32>
    %14 = arith.addf %12, %13 : vector<8x1xf32>
    %15 = math.rsqrt %14 : vector<8x1xf32>
    %cst_6 = arith.constant 1.000000e-01 : f32
    %16 = vector.broadcast %cst_6 : f32 to vector<8x1xf32>
    %17 = arith.mulf %16, %15 : vector<8x1xf32>
    %18 = vector.broadcast %17 : vector<8x1xf32> to vector<8x32xf32>
    %19 = arith.mulf %1, %18 : vector<8x32xf32>
    %20 = arith.addf %9, %19 : vector<8x32xf32>
    %21 = arith.mulf %20, %20 : vector<8x32xf32>
    %cst_7 = arith.constant dense<0.000000e+00> : vector<8xf32>
    %22 = vector.multi_reduction <add>, %21, %cst_7 [1] : vector<8x32xf32> to vector<8xf32>
    %23 = vector.shape_cast %22 : vector<8xf32> to vector<8x1xf32>
    %cst_8 = arith.constant 9.99999996E-13 : f32
    %24 = vector.broadcast %cst_8 : f32 to vector<8x1xf32>
    %25 = arith.addf %23, %24 : vector<8x1xf32>
    %26 = math.rsqrt %25 : vector<8x1xf32>
    %27 = vector.broadcast %26 : vector<8x1xf32> to vector<8x32xf32>
    %28 = arith.mulf %20, %27 : vector<8x32xf32>
    %29 = arith.truncf %28 : vector<8x32xf32> to vector<8x32xbf16>
    %c0_9 = arith.constant 0 : index
    %c0_10 = arith.constant 0 : index
    %30 = vector.load %arg4[%c0_9, %c0_10] : memref<32x128xbf16, #tpu.memory_space<vmem>>, vector<32x128xbf16>
    %cst_11 = arith.constant dense<0.000000e+00> : vector<8x128xf32>
    %31 = tpu.matmul %29, %30, %cst_11 {dimension_numbers = #tpu.dot_dimension_numbers<[1], [0], [0], [1], [0, 0, 1, 1], [], []>} : vector<8x32xbf16>, vector<32x128xbf16>, vector<8x128xf32> -> vector<8x128xf32>
    %c0_12 = arith.constant 0 : index
    %c0_13 = arith.constant 0 : index
    %32 = vector.load %arg5[%c0_12, %c0_13] : memref<1x128xf32, #tpu.memory_space<vmem>>, vector<1x128xf32>
    %33 = vector.broadcast %32 : vector<1x128xf32> to vector<8x128xf32>
    %34 = arith.addf %31, %33 : vector<8x128xf32>
    %cst_14 = arith.constant dense<0xFF800000> : vector<8xf32>
    %35 = vector.multi_reduction <maximumf>, %34, %cst_14 [1] : vector<8x128xf32> to vector<8xf32>
    %36 = vector.shape_cast %35 : vector<8xf32> to vector<8x1xf32>
    %37 = vector.broadcast %36 : vector<8x1xf32> to vector<8x128xf32>
    %38 = arith.subf %34, %37 : vector<8x128xf32>
    %39 = math.exp %38 : vector<8x128xf32>
    %cst_15 = arith.constant dense<0.000000e+00> : vector<8xf32>
    %40 = vector.multi_reduction <add>, %39, %cst_15 [1] : vector<8x128xf32> to vector<8xf32>
    %41 = vector.shape_cast %40 : vector<8xf32> to vector<8x1xf32>
    %42 = math.log %41 : vector<8x1xf32>
    %43 = arith.addf %42, %36 : vector<8x1xf32>
    %c0_16 = arith.constant 0 : index
    %c0_17 = arith.constant 0 : index
    %44 = vector.load %arg3[%c0_16, %c0_17] : memref<8x1xi32, #tpu.memory_space<vmem>>, vector<8x1xi32>
    %45 = tpu.iota {dimensions = array<i32: 1>} : vector<8x128xi32>
    %46 = vector.broadcast %44 : vector<8x1xi32> to vector<8x128xi32>
    %47 = arith.cmpi eq, %45, %46 : vector<8x128xi32>
    %cst_18 = arith.constant 0.000000e+00 : f32
    %48 = vector.broadcast %cst_18 : f32 to vector<8x128xf32>
    %49 = arith.select %47, %34, %48 : vector<8x128xi1>, vector<8x128xf32>
    %cst_19 = arith.constant dense<0.000000e+00> : vector<8xf32>
    %50 = vector.multi_reduction <add>, %49, %cst_19 [1] : vector<8x128xf32> to vector<8xf32>
    %51 = vector.shape_cast %50 : vector<8xf32> to vector<8x1xf32>
    %c8_i32 = arith.constant 8 : i32
    %52 = arith.muli %arg0, %c8_i32 : i32
    %53 = tpu.iota {dimensions = array<i32: 0>} : vector<8x1xi32>
    %54 = vector.broadcast %52 : i32 to vector<8x1xi32>
    %55 = arith.addi %54, %53 : vector<8x1xi32>
    %c8_i32_20 = arith.constant 8 : i32
    %56 = vector.broadcast %c8_i32_20 : i32 to vector<8x1xi32>
    %57 = arith.cmpi slt, %55, %56 : vector<8x1xi32>
    %58 = arith.subf %43, %51 : vector<8x1xf32>
    %cst_21 = arith.constant 0.000000e+00 : f32
    %59 = vector.broadcast %cst_21 : f32 to vector<8x1xf32>
    %60 = arith.select %57, %58, %59 : vector<8x1xi1>, vector<8x1xf32>
    %61 = vector.shape_cast %60 : vector<8x1xf32> to vector<1x8x1xf32>
    %cst_22 = arith.constant dense<0.000000e+00> : vector<1xf32>
    %62 = vector.multi_reduction <add>, %61, %cst_22 [1, 2] : vector<1x8x1xf32> to vector<1xf32>
    %63 = vector.shape_cast %62 : vector<1xf32> to vector<1x1x1xf32>
    %64 = vector.extract %63[0, 0, 0] : f32 from vector<1x1x1xf32>
    %65 = vector.broadcast %64 : f32 to vector<1x1xf32>
    %c0_23 = arith.constant 0 : index
    %c0_24 = arith.constant 0 : index
    %66 = vector.load %arg6[%c0_23, %c0_24] : memref<1x1xf32, #tpu.memory_space<vmem>>, vector<1x1xf32>
    tpu.vector_store %arg6[%c0_23, %c0_24], %65 {strides = array<i32>} : memref<1x1xf32, #tpu.memory_space<vmem>>, vector<1x1xf32>,
    return
  }
  func.func @transform_0(%arg0: i32) -> (i32, i32) {
    %c0_i32 = arith.constant 0 : i32
    %c0_i32_0 = arith.constant 0 : i32
    return %arg0, %c0_i32 : i32, i32
  }
  func.func @transform_1(%arg0: i32) -> (i32, i32) {
    %c0_i32 = arith.constant 0 : i32
    %c0_i32_0 = arith.constant 0 : i32
    return %arg0, %c0_i32 : i32, i32
  }
  func.func @transform_2(%arg0: i32) -> (i32, i32) {
    %c0_i32 = arith.constant 0 : i32
    %c0_i32_0 = arith.constant 0 : i32
    return %arg0, %c0_i32 : i32, i32
  }
  func.func @transform_3(%arg0: i32) -> (i32, i32) {
    %c0_i32 = arith.constant 0 : i32
    %c0_i32_0 = arith.constant 0 : i32
    %c0_i32_1 = arith.constant 0 : i32
    return %c0_i32, %c0_i32_0 : i32, i32
  }
  func.func @transform_4(%arg0: i32) -> (i32, i32) {
    %c0_i32 = arith.constant 0 : i32
    %c0_i32_0 = arith.constant 0 : i32
    %c0_i32_1 = arith.constant 0 : i32
    return %c0_i32, %c0_i32_0 : i32, i32
  }
  func.func @transform_5(%arg0: i32) -> (i32, i32) {
    %c0_i32 = arith.constant 0 : i32
    %c0_i32_0 = arith.constant 0 : i32
    return %arg0, %c0_i32 : i32, i32
  }
}

</mosaic_0001>

<bundles_post_ra>
// kernel: tpu_custom_call.1
= control target key start
LH: loop header
LB: loop body
LE: loop exit
PB: predicated region body
PF: predicated region fallthrough
CT: control target
= control target key end

     0   :  { %10 = vsyncpa [#allocation3], 0  ;;  %s393_s0 = inlined_call_operand.hbm [shape: f32[8,32], index: 0, kind: input, shape index: {}]   ;;  %s394_s1 = inlined_call_operand.hbm [shape: f32[8,32], index: 1, kind: input, shape index: {}]   ;;  %s395_s2 = inlined_call_operand.vmem [shape: s32[8,1], index: 2, kind: input, shape index: {}]   ;;  %s396_s3 = inlined_call_operand.vmem [shape: bf16[32,128], index: 3, kind: input, shape index: {}]   ;;  %s397_s4 = inlined_call_operand.vmem [shape: f32[1,128], index: 4, kind: input, shape index: {}]   ;;  %s398_s5 = inlined_call_operand.hbm [shape: f32[1,1], index: 5, kind: output, shape index: {}]  }
   0x1   :  { %11 = vsyncpa [#allocation6], 0 }
   0x2   :  { %12 = vsyncpa [#allocation4], 0  ;;  %s305_s18 = smov [#allocation2]   ;;  %s306_s20 = smov [#allocation5]  }
   0x3   :  { %s19_s19 = sshll.u32 %s305_s18, 4  ;;  %s29_s21 = sshll.u32 %s306_s20, 4  ;;  %s20_s19 = int_to_ptr.vmem [resolvable:$true] %s19_s19  ;;  %s30_s21 = int_to_ptr.vmem [resolvable:$true] %s29_s21 }
   0x4   :  { %s233_s24 = scalar_lea.hbm %s393_s0, 128 }
   0x5   :  { %p234_p0 = scmp.ne.s32.totalorder %s393_s0, %s233_s24  ;;  %p237_p1 = scmp.lt.u32.totalorder %s233_s24, %s393_s0 }
   0x7   :  { %p239_p2 = pnand %p237_p1, %p234_p0 }
   0x9   :  { %242 = shalt.err (!%p239_p2)
}
   0xa   :  { %s243_s29 = scalar_lea.vmem %s20_s19, 128  ;;  %p248_p4 = scmp.lt.s32.totalorder %s20_s19, %s20_s19 }
   0xb   :  { %p244_p3 = scmp.ne.s32.totalorder %s20_s19, %s243_s29  ;;  %p249_p5 = scmp.lt.s32.totalorder %s243_s29, %s243_s29 }
   0xd   :  { %p250_p6 = por %p249_p5, %p248_p4 }
   0xf   :  { %p251_p7 = pnand %p250_p6, %p244_p3 }
  0x11   :  { %254 = shalt.err (!%p251_p7)
}
  0x12   :  { %22 = dma.hbm_to_vmem [thread:$0]  %s393_s0, 128, %s20_s19, [#allocation3]  }
  0x13   :  { %s255_s9 = scalar_lea.hbm %s394_s1, 128 }
  0x14   :  { %p256_p8 = scmp.ne.s32.totalorder %s394_s1, %s255_s9  ;;  %p259_p9 = scmp.lt.u32.totalorder %s255_s9, %s394_s1 }
  0x16   :  { %p261_p10 = pnand %p259_p9, %p256_p8 }
  0x18   :  { %264 = shalt.err (!%p261_p10)
}
  0x19   :  { %s265_s14 = scalar_lea.vmem %s30_s21, 128  ;;  %p270_p12 = scmp.lt.s32.totalorder %s30_s21, %s30_s21 }
  0x1a   :  { %p266_p11 = scmp.ne.s32.totalorder %s30_s21, %s265_s14  ;;  %p271_p13 = scmp.lt.s32.totalorder %s265_s14, %s265_s14 }
  0x1c   :  { %p272_p0 = por %p271_p13, %p270_p12 }
  0x1e   :  { %p273_p1 = pnand %p272_p0, %p266_p11 }
  0x20   :  { %276 = shalt.err (!%p273_p1)
}
  0x21   :  { %32 = dma.hbm_to_vmem [thread:$0]  %s394_s1, 128, %s30_s21, [#allocation6]  }
  0x22   :  { %299 = dma.done.wait [#allocation3], 128  }
  0x23   :  { %300 = vsyncadd [#allocation3], 4294967168 }
  0x24   :  { %301 = dma.done.wait [#allocation6], 128  }
  0x25   :  { %302 = vsyncadd [#allocation6], 4294967168  ;;  %v47_v0 = vld [vmem:[#allocation5] sm:$0xff]  ;;  %vm49_vm0 = vcmask 261120   ;;  %v46_v1 = vld [vmem:[#allocation2] sm:$0xff]  ;;  %v307_v19 = vmov 0.0   ;;  %v150_v37 = vlaneseq }
  0x26   :  { %v56_v2 = vmul.f32 %v47_v0, %v47_v0  ;;  %v48_v3 = vmul.f32 %v46_v1, %v46_v1  ;;  %v221_v18 = vld [vmem:[%s396_s3] sm:$0xff]   ;;  %204 = vmatprep.subr.bf16.mxu0 %v307_v19  ;;  %vm308_vm1 = vmmov 0   ;;  %v222_v20 = vld [vmem:[%s396_s3 + $0x8] sm:$0xff]   ;;  %v309_v22 = vmov 0  }
  0x27   :  { %208 = vmatprep.mubr.msk.bf16.mxu0 %vm308_vm1, %v307_v19  ;;  %205 = vmatpush3.bf16.msra.mxu0 %v221_v18  ;;  %v149_v21 = vld [vmem:[%s395_s2] sm:$0xff]  ;;  %v151_v38 = vand.u32 127, %v150_v37  ;;  %vm167_vm3 = vcmask 7168   ;;  %s310_s2 = smov [#allocation7]   ;;  %vm179_vm4 = vcmask 0  }
  0x28   :  { %v57_v4 = vsel %vm49_vm0, %v56_v2, 0.0  ;;  %v50_v5 = vsel %vm49_vm0, %v48_v3, 0.0  ;;  %206 = vmatprep.subr.bf16.mxu0 %v307_v19  ;;  %220 = vset.pattern.permute.xlu0 %v309_v22  ;;  %v197_v28 = vld [vmem:[%s397_s4] ss:$0 sm:$0xff]  ;;  %s187_s3 = sshll.u32 %s310_s2, 4  ;;  %s188_s3 = int_to_ptr.vmem [resolvable:$true] %s187_s3 }
  0x29   :  { %58 = vadd.xlane.f32.xlu0 %v57_v4  ;;  %s277_s23 = scalar_lea.vmem %s188_s3, 16  ;;  %s281_s24 = scalar_lea.vmem %s188_s3, 32 }
  0x2a   :  { %p278_p2 = scmp.ne.s32.totalorder %s188_s3, %s277_s23  ;;  %p282_p3 = scmp.lt.s32.totalorder %s188_s3, %s188_s3 }
  0x2b   :  { %207 = vmatpush3.bf16.msra.mxu0 %v222_v20  ;;  %p283_p4 = scmp.lt.s32.totalorder %s281_s24, %s277_s23 }
  0x2d   :  { %51 = vadd.xlane.f32.xlu0 %v50_v5  ;;  %p284_p5 = por %p283_p4, %p282_p3 }
  0x2f   :  { %p285_p6 = pnand %p284_p5, %p278_p2 }
  0x43   :  { %153 = vperm.xlu0 %220, %v149_v21  }
  0xb6   :  { %v59_v6 = vpop.xlane.xlu0 %58 }
  0xb7   :  { %v60_v7 = vadd.f32 1e-12, %v59_v6 }
  0xb9   :  { %223 = vrsqrt.f32 %v60_v7 }
  0xba   :  { %v52_v8 = vpop.xlane.xlu0 %51 }
  0xbb   :  { %v53_v9 = vadd.f32 1e-12, %v52_v8 }
  0xbd   :  { %225 = vrsqrt.f32 %v53_v9 }
  0xc2   :  { %v154_v39 = vpop.permute.xlu0 %153 }
  0xc3   :  { %v224_v10 = vpop.eup %223  ;;  %vm155_vm2 = vcmp.eq.s32.totalorder %v151_v38, %v154_v39 }
  0xc4   :  { %v62_v11 = vmul.f32 0.1, %v224_v10 }
  0xc6   :  { %v63_v14 = vmul.f32 %v62_v11, %v47_v0 }
  0xc7   :  { %v226_v12 = vpop.eup %225 }
  0xc8   :  { %v55_v13 = vmul.f32 %v226_v12, %v46_v1 }
  0xca   :  { %v64_v15 = vadd.f32 %v63_v14, %v55_v13 }
  0xcc   :  { %v65_v16 = vmul.f32 %v64_v15, %v64_v15 }
  0xce   :  { %v66_v17 = vsel %vm49_vm0, %v65_v16, 0.0 }
  0xcf   :  { %67 = vadd.xlane.f32.xlu1 %v66_v17 }
 0x15c   :  { %v68_v23 = vpop.xlane.xlu1 %67 }
 0x15d   :  { %v69_v24 = vadd.f32 1e-12, %v68_v23 }
 0x15f   :  { %227 = vrsqrt.f32 %v69_v24 }
 0x169   :  { %v228_v25 = vpop.eup %227 }
 0x16a   :  { %v71_v26 = vmul.f32 %v228_v25, %v64_v15 }
 0x16c   :  { %v72_v27 = vpack.c.bf16 %v71_v26, %v71_v26 }
 0x16e   :  { %209 = vmatmul.mubr.msk.bf16.vlgmr.msra.gmra.mrb[0].mxu0 %vm49_vm0, %v72_v27 }
 0x241   :  { %v133_v29 = vpop.f32.mrb[0].mxu0 }
 0x242   :  { %v134_v30 = vadd.f32 %v197_v28, %v133_v29  ;;  %v210_v31 = vpop.f32.mrb[1].mxu0 }
 0x243   :  { %v136_v32 = vpop.f32.mrb[2].mxu0 }
 0x244   :  { %139 = vmax.xlane.f32.xlu1 %v134_v30  ;;  %v211_v33 = vpop.f32.mrb[3].mxu0  ;;  %v156_v41 = vsel %vm155_vm2, %v134_v30, 0.0 }
 0x2d1   :  { %v140_v34 = vpop.xlane.xlu1 %139 }
 0x2d2   :  { %v141_v35 = vsub.f32 %v134_v30, %v140_v34 }
 0x2d4   :  { %v142_v36 = vmul.f32 1.442695, %v141_v35 }
 0x2d6   :  { %229 = vpow2.f32 %v142_v36 }
 0x2e0   :  { %v230_v40 = vpop.eup %229 }
 0x2e1   :  { %144 = vadd.xlane.f32.xlu1 %v230_v40 }
 0x2e5   :  { %157 = vadd.xlane.f32.xlu1 %v156_v41 }
 0x36e   :  { %v145_v42 = vpop.xlane.xlu1 %144 }
 0x36f   :  { %231 = vlog2.f32 %v145_v42 }
 0x372   :  { %v158_v46 = vpop.xlane.xlu1 %157 }
 0x379   :  { %v232_v43 = vpop.eup %231 }
 0x37a   :  { %v147_v44 = vmul.f32 0.6931472, %v232_v43 }
 0x37c   :  { %v148_v45 = vadd.f32 %v147_v44, %v140_v34 }
 0x37e   :  { %v165_v47 = vsub.f32 %v148_v45, %v158_v46 }
 0x380   :  { %v168_v48 = vsel %vm167_vm3, %v165_v47, 0.0 }
 0x381   :  { %169 = vadd.xlane.f32.xlu1 %v168_v48 }
 0x40e   :  { %v170_v49 = vpop.xlane.xlu1 %169 }
 0x40f   :  { %v171_v50 = vrot.slane %v170_v49, 4 }
 0x411   :  { %v172_v51 = vadd.f32 %v171_v50, %v170_v49 }
 0x413   :  { %v173_v52 = vrot.slane %v172_v51, 2 }
 0x415   :  { %v174_v53 = vadd.f32 %v173_v52, %v172_v51 }
 0x417   :  { %v175_v54 = vrot.slane %v174_v53, 1 }
 0x419   :  { %v176_v55 = vadd.f32 %v175_v54, %v174_v53 }
 0x41b   :  { %212 = vpush %v176_v55 }
 0x44c   :  { %s213_s4 = spop %212 }
 0x44d   :  { %v178_v56 = vstv %s213_s4 }
 0x44e   :  { %180 = vst.msk [vmem:[#allocation7] sm:$0x1] %vm179_vm4, %v178_v56 }
 0x44f   :  { %288 = shalt.err (!%p285_p6)
}
 0x450   :  { %s289_s27 = scalar_lea.hbm %s398_s5, 16 }
 0x451   :  { %p290_p7 = scmp.ne.s32.totalorder %s398_s5, %s289_s27  ;;  %p293_p8 = scmp.lt.u32.totalorder %s289_s27, %s398_s5 }
 0x453   :  { %p295_p9 = pnand %p293_p8, %p290_p7 }
 0x455   :  { %298 = shalt.err (!%p295_p9)
}
 0x456   :  { %190 = dma.vmem_to_hbm [thread:$0]  %s188_s3, 16, %s398_s5, [#allocation4]  }
 0x457   :  { %303 = dma.done.wait [#allocation4], 16  }
 0x458   :  { %304 = vsyncadd [#allocation4], 4294967280 }
 0x459   :  { %194 = vsyncpa [#allocation3], 1 }
 0x45a   :  { %195 = vsyncpa [#allocation6], 1 }
 0x45b   :  { %196 = vsyncpa [#allocation4], 1 }

</bundles_post_ra>
